<compile_context>
chip_gen: v7x
topology: tpu7x:2x2x1
jax: 0.10.0
libtpu: 0.0.40
codegen_flags: <defaults>
</compile_context>

<pallas_src>
import functools

import jax
import jax.numpy as jnp
from jax.experimental import pallas as pl
from jax.experimental.pallas import tpu as pltpu

MARGIN = 0.2


def _triple_loss_kernel(a_ref, p_ref, n_ref, out_ref, *, tb, batch):
    a = a_ref[...]
    p = p_ref[...]
    n = n_ref[...]
    # Single up-cast per tile if inputs are not already f32 (e.g. bf16).
    if a.dtype != jnp.float32:
        a = a.astype(jnp.float32)
        p = p.astype(jnp.float32)
        n = n.astype(jnp.float32)

    # Fused distance difference:
    #   (a-p)^2 - (a-n)^2 = (n - p) * (2a - p - n)
    # -> one elementwise product + one lane (axis=1) reduction per tile.
    diff = (n - p) * (2.0 * a - p - n)
    d = jnp.sum(diff, axis=1, keepdims=True)          # (tb, 1)
    loss = jnp.maximum(d + MARGIN, 0.0)               # relu, (tb, 1)

    # Mask out rows past the true batch size (last partial tile).
    row = (jax.lax.broadcasted_iota(jnp.int32, loss.shape, 0)
           + pl.program_id(0) * tb)
    loss = jnp.where(row < batch, loss, 0.0)

    # Per-tile partial sum -> scalar in SMEM.
    out_ref[0, 0] = jnp.sum(loss)


def _pick_tile(batch, dim):
    # 3 inputs x 2 pipeline buffers x (tb, dim) f32 should stay well inside
    # the scoped-VMEM budget on every chip (v5e 16 MiB default, v7x 32/64 MiB).
    budget = 8 * 1024 * 1024
    per_row = 3 * 2 * dim * 4
    tb = max(8, (budget // per_row) // 8 * 8)
    padded_b = max(8, ((batch + 7) // 8) * 8)
    return min(tb, padded_b)


def triple_loss(anchor, positive, negative, *, tb=None):
    B, D = anchor.shape
    if tb is None:
        tb = _pick_tile(B, D)
    num_tiles = pl.cdiv(B, tb)

    kernel = functools.partial(_triple_loss_kernel, tb=tb, batch=B)
    partials = pl.pallas_call(
        kernel,
        out_shape=jax.ShapeDtypeStruct((num_tiles, 1), jnp.float32),
        grid=(num_tiles,),
        in_specs=[
            pl.BlockSpec((tb, D), lambda i: (i, 0)),
            pl.BlockSpec((tb, D), lambda i: (i, 0)),
            pl.BlockSpec((tb, D), lambda i: (i, 0)),
        ],
        out_specs=pl.BlockSpec((1, 1), lambda i: (i, 0),
                               memory_space=pltpu.SMEM),
        compiler_params=pltpu.CompilerParams(
            dimension_semantics=("parallel",)),
    )(anchor, positive, negative)

    # Final reduction (tiny) in the wrapper; divide by the true batch size.
    return jnp.sum(partials) / jnp.float32(B)


def triple_loss_ref(anchor, positive, negative):
    pos_dist = jnp.sum((anchor - positive) ** 2, axis=1)
    neg_dist = jnp.sum((anchor - negative) ** 2, axis=1)
    return jnp.mean(jnp.maximum(pos_dist - neg_dist + MARGIN, 0.0))


if __name__ == "__main__":
    key = jax.random.PRNGKey(0)
    k1, k2, k3 = jax.random.split(key, 3)

    # Primary small case: batch=8, feature dim=128.
    B, D = 8, 128
    anchor = jax.random.normal(k1, (B, D), dtype=jnp.float32)
    positive = jax.random.normal(k2, (B, D), dtype=jnp.float32)
    negative = jax.random.normal(k3, (B, D), dtype=jnp.float32)

    out = jax.block_until_ready(triple_loss(anchor, positive, negative))
    ref = triple_loss_ref(anchor, positive, negative)
    assert jnp.allclose(out, ref, rtol=1e-5, atol=1e-5), (out, ref)

    # Multi-tile + ragged-batch case to exercise pipelining and row masking.
    B2, D2 = 20, 256
    k4, k5, k6 = jax.random.split(k1, 3)
    a2 = jax.random.normal(k4, (B2, D2), dtype=jnp.float32)
    p2 = jax.random.normal(k5, (B2, D2), dtype=jnp.float32)
    n2 = jax.random.normal(k6, (B2, D2), dtype=jnp.float32)
    out2 = jax.block_until_ready(triple_loss(a2, p2, n2, tb=8))
    ref2 = triple_loss_ref(a2, p2, n2)
    assert jnp.allclose(out2, ref2, rtol=1e-4, atol=1e-5), (out2, ref2)

    print("KERNEL_OK")
</pallas_src>

<mosaic_0001>
module attributes {stable_mosaic.version = 11 : i64} {
  func.func @_triple_loss_kernel(%arg0: i32, %arg1: memref<8x128xf32, #tpu.memory_space<vmem>>, %arg2: memref<8x128xf32, #tpu.memory_space<vmem>>, %arg3: memref<8x128xf32, #tpu.memory_space<vmem>>, %arg4: memref<1x1xf32, #tpu.memory_space<smem>>) attributes {dimension_semantics = [#tpu.dimension_semantics<parallel>], iteration_bounds = array<i64: 1>, scalar_prefetch = 0 : i64, scratch_operands = 0 : i64, tpu.core_type = #tpu.core_type<tc>, window_params = [{transform_indices = @transform_0, window_bounds = array<i64: 8, 128>}, {transform_indices = @transform_1, window_bounds = array<i64: 8, 128>}, {transform_indices = @transform_2, window_bounds = array<i64: 8, 128>}, {transform_indices = @transform_3, window_bounds = array<i64: 1, 1>}]} {
    %c0 = arith.constant 0 : index
    %c0_0 = arith.constant 0 : index
    %0 = vector.load %arg1[%c0, %c0_0] : memref<8x128xf32, #tpu.memory_space<vmem>>, vector<8x128xf32>
    %c0_1 = arith.constant 0 : index
    %c0_2 = arith.constant 0 : index
    %1 = vector.load %arg2[%c0_1, %c0_2] : memref<8x128xf32, #tpu.memory_space<vmem>>, vector<8x128xf32>
    %c0_3 = arith.constant 0 : index
    %c0_4 = arith.constant 0 : index
    %2 = vector.load %arg3[%c0_3, %c0_4] : memref<8x128xf32, #tpu.memory_space<vmem>>, vector<8x128xf32>
    %3 = arith.subf %2, %1 : vector<8x128xf32>
    %cst = arith.constant 2.000000e+00 : f32
    %4 = vector.broadcast %cst : f32 to vector<8x128xf32>
    %5 = arith.mulf %4, %0 : vector<8x128xf32>
    %6 = arith.subf %5, %1 : vector<8x128xf32>
    %7 = arith.subf %6, %2 : vector<8x128xf32>
    %8 = arith.mulf %3, %7 : vector<8x128xf32>
    %cst_5 = arith.constant dense<0.000000e+00> : vector<8xf32>
    %9 = vector.multi_reduction <add>, %8, %cst_5 [1] : vector<8x128xf32> to vector<8xf32>
    %10 = vector.shape_cast %9 : vector<8xf32> to vector<8x1xf32>
    %cst_6 = arith.constant 2.000000e-01 : f32
    %11 = vector.broadcast %cst_6 : f32 to vector<8x1xf32>
    %12 = arith.addf %10, %11 : vector<8x1xf32>
    %cst_7 = arith.constant 0.000000e+00 : f32
    %13 = vector.broadcast %cst_7 : f32 to vector<8x1xf32>
    %14 = arith.maximumf %12, %13 : vector<8x1xf32>
    %15 = tpu.iota {dimensions = array<i32: 0>} : vector<8x1xi32>
    %c8_i32 = arith.constant 8 : i32
    %16 = arith.muli %arg0, %c8_i32 : i32
    %17 = vector.broadcast %16 : i32 to vector<8x1xi32>
    %18 = arith.addi %15, %17 : vector<8x1xi32>
    %c8_i32_8 = arith.constant 8 : i32
    %19 = vector.broadcast %c8_i32_8 : i32 to vector<8x1xi32>
    %20 = arith.cmpi slt, %18, %19 : vector<8x1xi32>
    %cst_9 = arith.constant 0.000000e+00 : f32
    %21 = vector.broadcast %cst_9 : f32 to vector<8x1xf32>
    %22 = arith.select %20, %14, %21 : vector<8x1xi1>, vector<8x1xf32>
    %23 = vector.shape_cast %22 : vector<8x1xf32> to vector<1x8x1xf32>
    %cst_10 = arith.constant dense<0.000000e+00> : vector<1xf32>
    %24 = vector.multi_reduction <add>, %23, %cst_10 [1, 2] : vector<1x8x1xf32> to vector<1xf32>
    %25 = vector.shape_cast %24 : vector<1xf32> to vector<1x1x1xf32>
    %26 = vector.extract %25[0, 0, 0] : f32 from vector<1x1x1xf32>
    %c0_11 = arith.constant 0 : index
    %c0_12 = arith.constant 0 : index
    %27 = memref.load %arg4[%c0_11, %c0_12] : memref<1x1xf32, #tpu.memory_space<smem>>
    memref.store %26, %arg4[%c0_11, %c0_12] : memref<1x1xf32, #tpu.memory_space<smem>>
    return
  }
  func.func @transform_0(%arg0: i32) -> (i32, i32) {
    %c0_i32 = arith.constant 0 : i32
    %c0_i32_0 = arith.constant 0 : i32
    return %arg0, %c0_i32 : i32, i32
  }
  func.func @transform_1(%arg0: i32) -> (i32, i32) {
    %c0_i32 = arith.constant 0 : i32
    %c0_i32_0 = arith.constant 0 : i32
    return %arg0, %c0_i32 : i32, i32
  }
  func.func @transform_2(%arg0: i32) -> (i32, i32) {
    %c0_i32 = arith.constant 0 : i32
    %c0_i32_0 = arith.constant 0 : i32
    return %arg0, %c0_i32 : i32, i32
  }
  func.func @transform_3(%arg0: i32) -> (i32, i32) {
    %c0_i32 = arith.constant 0 : i32
    %c0_i32_0 = arith.constant 0 : i32
    return %arg0, %c0_i32 : i32, i32
  }
}

</mosaic_0001>

<bundles_post_ra>
// kernel: tpu_custom_call.1
= control target key start
LH: loop header
LB: loop body
LE: loop exit
PB: predicated region body
PF: predicated region fallthrough
CT: control target
= control target key end

     0   :  { %8 = vsyncpa [#allocation3], 0  ;;  %s257_s0 = inlined_call_operand.hbm [shape: f32[8,128], index: 0, kind: input, shape index: {}]   ;;  %s258_s1 = inlined_call_operand.hbm [shape: f32[8,128], index: 1, kind: input, shape index: {}]   ;;  %s259_s2 = inlined_call_operand.hbm [shape: f32[8,128], index: 2, kind: input, shape index: {}]   ;;  %s260_s3 = inlined_call_operand.hbm [shape: f32[1,1], index: 3, kind: output, shape index: {}]  }
   0x1   :  { %9 = vsyncpa [#allocation6], 0 }
   0x2   :  { %10 = vsyncpa [#allocation4], 0  ;;  %s185_s12 = smov [#allocation5]   ;;  %s186_s14 = smov [#allocation2]  }
   0x3   :  { %s27_s13 = sshll.u32 %s185_s12, 4  ;;  %s17_s15 = sshll.u32 %s186_s14, 4  ;;  %s28_s13 = int_to_ptr.vmem [resolvable:$true] %s27_s13  ;;  %s18_s15 = int_to_ptr.vmem [resolvable:$true] %s17_s15 }
   0x4   :  { %s103_s18 = scalar_lea.hbm %s258_s1, 128 }
   0x5   :  { %p104_p0 = scmp.ne.s32.totalorder %s258_s1, %s103_s18  ;;  %p107_p1 = scmp.lt.u32.totalorder %s103_s18, %s258_s1 }
   0x7   :  { %p109_p2 = pnand %p107_p1, %p104_p0 }
   0x9   :  { %112 = shalt.err (!%p109_p2)
}
   0xa   :  { %s113_s23 = scalar_lea.vmem %s28_s13, 128  ;;  %p118_p4 = scmp.lt.s32.totalorder %s28_s13, %s28_s13 }
   0xb   :  { %p114_p3 = scmp.ne.s32.totalorder %s28_s13, %s113_s23  ;;  %p119_p5 = scmp.lt.s32.totalorder %s113_s23, %s113_s23 }
   0xd   :  { %p120_p6 = por %p119_p5, %p118_p4 }
   0xf   :  { %p121_p7 = pnand %p120_p6, %p114_p3 }
  0x11   :  { %124 = shalt.err (!%p121_p7)
}
  0x12   :  { %30 = dma.hbm_to_vmem [thread:$0]  %s258_s1, 128, %s28_s13, [#allocation6]  }
  0x13   :  { %s125_s28 = scalar_lea.hbm %s257_s0, 128 }
  0x14   :  { %p126_p8 = scmp.ne.s32.totalorder %s257_s0, %s125_s28  ;;  %p129_p9 = scmp.lt.u32.totalorder %s125_s28, %s257_s0 }
  0x16   :  { %p131_p10 = pnand %p129_p9, %p126_p8 }
  0x18   :  { %134 = shalt.err (!%p131_p10)
}
  0x19   :  { %s135_s6 = scalar_lea.vmem %s18_s15, 128  ;;  %p140_p12 = scmp.lt.s32.totalorder %s18_s15, %s18_s15 }
  0x1a   :  { %p136_p11 = scmp.ne.s32.totalorder %s18_s15, %s135_s6  ;;  %p141_p13 = scmp.lt.s32.totalorder %s135_s6, %s135_s6 }
  0x1c   :  { %p142_p0 = por %p141_p13, %p140_p12 }
  0x1e   :  { %p143_p1 = pnand %p142_p0, %p136_p11 }
  0x20   :  { %146 = shalt.err (!%p143_p1)
}
  0x21   :  { %20 = dma.hbm_to_vmem [thread:$0]  %s257_s0, 128, %s18_s15, [#allocation3]  }
  0x22   :  { %s187_s8 = smov [#allocation7]   ;;  %s147_s12 = scalar_lea.hbm %s259_s2, 128 }
  0x23   :  { %s37_s9 = sshll.u32 %s187_s8, 4  ;;  %p148_p2 = scmp.ne.s32.totalorder %s259_s2, %s147_s12  ;;  %s38_s9 = int_to_ptr.vmem [resolvable:$true] %s37_s9 }
  0x24   :  { %p151_p3 = scmp.lt.u32.totalorder %s147_s12, %s259_s2 }
  0x26   :  { %p153_p4 = pnand %p151_p3, %p148_p2 }
  0x28   :  { %156 = shalt.err (!%p153_p4)
}
  0x29   :  { %s157_s18 = scalar_lea.vmem %s38_s9, 128  ;;  %p162_p6 = scmp.lt.s32.totalorder %s38_s9, %s38_s9 }
  0x2a   :  { %p158_p5 = scmp.ne.s32.totalorder %s38_s9, %s157_s18  ;;  %p163_p7 = scmp.lt.s32.totalorder %s157_s18, %s157_s18 }
  0x2c   :  { %p164_p8 = por %p163_p7, %p162_p6 }
  0x2e   :  { %p165_p9 = pnand %p164_p8, %p158_p5 }
  0x30   :  { %168 = shalt.err (!%p165_p9)
}
  0x31   :  { %40 = dma.hbm_to_vmem [thread:$0]  %s259_s2, 128, %s38_s9, [#allocation6]  }
  0x32   :  { %179 = dma.done.wait [#allocation3], 128  }
  0x33   :  { %180 = vsyncadd [#allocation3], 4294967168 }
  0x34   :  { %181 = dma.done.wait [#allocation6], 256  }
  0x35   :  { %182 = vsyncadd [#allocation6], 4294967040  ;;  %v50_v0 = vld [vmem:[#allocation2] sm:$0xff]  ;;  %v51_v1 = vld [vmem:[#allocation5] sm:$0xff]  ;;  %vm69_vm0 = vcmask 7168   ;;  %s169_s21 = scalar_lea.hbm %s260_s3, 16 }
  0x36   :  { %v52_v2 = vld [vmem:[#allocation7] sm:$0xff]  ;;  %v54_v3 = vmul.f32 2.0, %v50_v0  ;;  %p170_p10 = scmp.ne.s32.totalorder %s260_s3, %s169_s21  ;;  %p173_p11 = scmp.lt.u32.totalorder %s169_s21, %s260_s3 }
  0x37   :  { %v53_v4 = vsub.f32 %v52_v2, %v51_v1 }
  0x38   :  { %v55_v5 = vsub.f32 %v54_v3, %v51_v1  ;;  %p175_p12 = pnand %p173_p11, %p170_p10 }
  0x3a   :  { %v56_v6 = vsub.f32 %v55_v5, %v52_v2 }
  0x3c   :  { %v57_v7 = vmul.f32 %v56_v6, %v53_v4 }
  0x3e   :  { %58 = vadd.xlane.f32.xlu0 %v57_v7 }
  0xcb   :  { %v59_v8 = vpop.xlane.xlu0 %58 }
  0xcc   :  { %v60_v9 = vadd.f32 0.2, %v59_v8 }
  0xce   :  { %v61_v10 = vmax.f32 %v60_v9, 0.0 }
  0xd0   :  { %v70_v11 = vsel %vm69_vm0, %v61_v10, 0.0 }
  0xd1   :  { %71 = vadd.xlane.f32.xlu0 %v70_v11 }
 0x15e   :  { %v72_v12 = vpop.xlane.xlu0 %71 }
 0x15f   :  { %v73_v13 = vrot.slane %v72_v12, 4 }
 0x161   :  { %v74_v14 = vadd.f32 %v73_v13, %v72_v12 }
 0x163   :  { %v75_v15 = vrot.slane %v74_v14, 2 }
 0x165   :  { %v76_v16 = vadd.f32 %v75_v15, %v74_v14 }
 0x167   :  { %v77_v17 = vrot.slane %v76_v16, 1 }
 0x169   :  { %v78_v18 = vadd.f32 %v77_v17, %v76_v16 }
 0x16b   :  { %97 = vpush %v78_v18 }
 0x19c   :  { %s98_s2 = spop %97 }
 0x19d   :  { %81 = sst [smem:[#allocation8]] %s98_s2 }
 0x19e   :  { %178 = shalt.err (!%p175_p12)
}
 0x19f   :  { %s188_s26 = smov [#allocation8]  }
 0x1a0   :  { %89 = dma.smem_to_hbm %s188_s26, 16, %s260_s3, [#allocation4]  }
 0x1a1   :  { %183 = dma.done.wait [#allocation4], 16  }
 0x1a2   :  { %184 = vsyncadd [#allocation4], 4294967280 }
 0x1a3   :  { %93 = sfence }
 0x1a4   :  { %94 = vsyncpa [#allocation3], 1 }
 0x1a5   :  { %95 = vsyncpa [#allocation6], 1 }
 0x1a6   :  { %96 = vsyncpa [#allocation4], 1 }

</bundles_post_ra>
